<compile_context>
chip_gen: v6e
topology: v6e:2x2x1
jax: 0.10.0
libtpu: 0.0.40
codegen_flags: <defaults>
</compile_context>

<pallas_src>
import functools
import math

import jax
import jax.numpy as jnp
import numpy as np
from jax.experimental import pallas as pl
from jax.experimental.pallas import tpu as pltpu

_R_EARTH = 6371009.0
_DEG2RAD = math.pi / 180.0
_EPS = 1e-10
_LANES = 128


def _triangulate_kernel(ev_ref, slab_ref, loss_ref, *, n, tile_r, tiles_per_core):
    # ev_ref   : (3,)              f32 SMEM  -> event (x, y, z)
    # slab_ref : (4, tile_r, 128)  f32 VMEM  -> rows: sta x / y / z / target dist
    # loss_ref : (1, 8, 128)       f32 VMEM  -> resident per-core partial sums
    c = pl.program_id(0)      # core (parallel)
    i = pl.program_id(1)      # tile within this core (arbitrary / reduction)

    @pl.when(i == 0)
    def _init():
        loss_ref[...] = jnp.zeros_like(loss_ref)

    dx = ev_ref[0] - slab_ref[0]
    dy = ev_ref[1] - slab_ref[1]
    dz = ev_ref[2] - slab_ref[2]
    dist = jnp.sqrt(dx * dx + dy * dy + dz * dz) + _EPS
    diff = dist - slab_ref[3]

    t = c * tiles_per_core + i                       # global tile index
    tile_elems = tile_r * _LANES
    is_full = (t + 1) * tile_elems <= n              # tile contains no padding

    def _accumulate(d):
        sq = d * d                                               # (tile_r, 128)
        # Fold sublane groups with pure VALU adds into the resident (1,8,128)
        # accumulator; no XLU reduce anywhere in the kernel.
        loss_ref[...] += sq.reshape(1, tile_r // 8, 8, _LANES).sum(axis=1)

    @pl.when(is_full)
    def _fast_path():
        _accumulate(diff)

    @pl.when(jnp.logical_not(is_full))
    def _masked_path():
        row = jax.lax.broadcasted_iota(jnp.int32, (tile_r, _LANES), 0)
        lane = jax.lax.broadcasted_iota(jnp.int32, (tile_r, _LANES), 1)
        gidx = (t * tile_r + row) * _LANES + lane
        _accumulate(jnp.where(gidx < n, diff, jnp.float32(0.0)))


def prepare_station_slab(staloc, dists, *, max_tile_rows=2048, num_cores=2):
    """One-time packing of constant station data.

    Hoist this out of any optimization loop over `evloc`: it precomputes the
    station xyz (loop-invariant trig) and lays it out as a lane-dense
    (4, rows, 128) slab so the kernel reads exactly one contiguous block per
    grid step.
    """
    staloc = jnp.asarray(staloc, jnp.float32)
    dists = jnp.asarray(dists, jnp.float32)
    n = int(staloc.shape[0])

    r_needed = max(1, -(-n // _LANES))                       # rows of 128 stations
    tile_r = int(min(max_tile_rows, ((r_needed + 7) // 8) * 8))
    tile_r = max(8, (tile_r // 8) * 8)                       # multiple of 8 sublanes
    total_tiles = -(-r_needed // tile_r)
    num_cores = max(1, min(int(num_cores), total_tiles))
    tiles_per_core = -(-total_tiles // num_cores)
    r_pad = num_cores * tiles_per_core * tile_r
    n_pad = r_pad * _LANES

    lat = staloc[:, 0] * _DEG2RAD
    lon = staloc[:, 1] * _DEG2RAD
    cos_lat = jnp.cos(lat)
    x = _R_EARTH * cos_lat * jnp.cos(lon)
    y = _R_EARTH * cos_lat * jnp.sin(lon)
    z = _R_EARTH * jnp.sin(lat)

    packed = jnp.stack([x, y, z, dists], axis=0)             # (4, N)
    packed = jnp.pad(packed, ((0, 0), (0, n_pad - n)))       # (4, n_pad)
    slab = packed.reshape(4, r_pad, _LANES)

    meta = dict(n=n, tile_r=tile_r, tiles_per_core=tiles_per_core,
                num_cores=num_cores)
    return slab, meta


def triangulate_loss_packed(slab, evloc_weight, *, n, tile_r, tiles_per_core,
                            num_cores):
    """Run the kernel on an already-packed station slab."""
    evloc_weight = jnp.asarray(evloc_weight, jnp.float32)

    # Event xyz: 3 scalars, precomputed here (differentiable w.r.t. evloc if
    # this wrapper is ever wrapped in jax.grad through the xyz math).
    ev_lat = evloc_weight[0, 0] * _DEG2RAD
    ev_lon = evloc_weight[0, 1] * _DEG2RAD
    ev_cos = jnp.cos(ev_lat)
    ev_xyz = jnp.stack([_R_EARTH * ev_cos * jnp.cos(ev_lon),
                        _R_EARTH * ev_cos * jnp.sin(ev_lon),
                        _R_EARTH * jnp.sin(ev_lat)]).astype(jnp.float32)   # (3,)

    kernel = functools.partial(_triangulate_kernel, n=n, tile_r=tile_r,
                               tiles_per_core=tiles_per_core)
    partials = pl.pallas_call(
        kernel,
        out_shape=jax.ShapeDtypeStruct((num_cores, 8, _LANES), jnp.float32),
        grid_spec=pltpu.PrefetchScalarGridSpec(
            num_scalar_prefetch=0,
            grid=(num_cores, tiles_per_core),
            in_specs=[
                pl.BlockSpec(memory_space=pltpu.MemorySpace.SMEM),   # event xyz
                pl.BlockSpec((4, tile_r, _LANES),
                             lambda c, i: (0, c * tiles_per_core + i, 0)),
            ],
            out_specs=pl.BlockSpec((1, 8, _LANES), lambda c, i: (c, 0, 0)),
        ),
        compiler_params=pltpu.CompilerParams(
            dimension_semantics=("parallel", "arbitrary")),
    )(ev_xyz, slab)

    return {"loss": jnp.sum(partials)}


def triangulate_loss(staloc, dists, evloc_weight, *, max_tile_rows=2048,
                     num_cores=2):
    """Convenience one-shot entry point: staloc (N,2), dists (N,), evloc (1,2)."""
    n = int(jnp.asarray(staloc).shape[0])
    if n == 0:
        return {"loss": jnp.zeros((), jnp.float32)}
    slab, meta = prepare_station_slab(staloc, dists,
                                      max_tile_rows=max_tile_rows,
                                      num_cores=num_cores)
    return triangulate_loss_packed(slab, evloc_weight, **meta)


def _reference_loss(staloc, dists, evloc_weight):
    """Pure-numpy (float64) reference mirroring the PyTorch module."""
    def xyz(loc):
        lat = np.deg2rad(loc[:, 0]).astype(np.float64)
        lon = np.deg2rad(loc[:, 1]).astype(np.float64)
        return (_R_EARTH * np.cos(lat) * np.cos(lon),
                _R_EARTH * np.cos(lat) * np.sin(lon),
                _R_EARTH * np.sin(lat))

    x1, y1, z1 = xyz(np.asarray(staloc, np.float64))
    x2, y2, z2 = xyz(np.asarray(evloc_weight, np.float64))
    dist = np.sqrt((x2 - x1) ** 2 + (y2 - y1) ** 2 + (z2 - z1) ** 2) + _EPS
    return float(np.sum((dist - np.asarray(dists, np.float64)) ** 2))


def _make_inputs(key, n):
    k_lat, k_lon, k_d, k_ev = jax.random.split(key, 4)
    sta_lat = jax.random.uniform(k_lat, (n,), jnp.float32, -5.0, 5.0)
    sta_lon = jax.random.uniform(k_lon, (n,), jnp.float32, 100.0, 110.0)
    staloc = jnp.stack([sta_lat, sta_lon], axis=1)                     # (N, 2)
    dists = jax.random.uniform(k_d, (n,), jnp.float32, 1e5, 6e5)       # (N,)
    evloc_weight = jnp.array([[1.5, 104.0]], jnp.float32)
    evloc_weight = evloc_weight + 0.01 * jax.random.normal(k_ev, (1, 2), jnp.float32)
    return staloc, dists, evloc_weight


if __name__ == "__main__":
    key = jax.random.PRNGKey(0)
    k_small, k_big = jax.random.split(key, 2)

    # Case 1: tiny N -> single tile, heavy lane padding masked in-kernel.
    staloc, dists, ev = _make_inputs(k_small, 8)
    out = triangulate_loss(staloc, dists, ev)
    loss = float(jax.block_until_ready(out["loss"]))
    ref = _reference_loss(np.asarray(staloc), np.asarray(dists), np.asarray(ev))
    assert np.isfinite(loss)
    assert np.allclose(loss, ref, rtol=1e-3), (loss, ref)

    # Case 2: multi-tile, two-way core split (grid (2,2), one fully padded
    # tile that must be masked to zero); max_tile_rows=8 forces small tiles.
    staloc2, dists2, ev2 = _make_inputs(k_big, 2500)
    out2 = triangulate_loss(staloc2, dists2, ev2, max_tile_rows=8, num_cores=2)
    loss2 = float(jax.block_until_ready(out2["loss"]))
    ref2 = _reference_loss(np.asarray(staloc2), np.asarray(dists2), np.asarray(ev2))
    assert np.isfinite(loss2)
    assert np.allclose(loss2, ref2, rtol=1e-3), (loss2, ref2)

    # Case 3: same data, single-core multi-tile reduction (grid (1,3)), and the
    # hoisted-packing path used explicitly.
    slab3, meta3 = prepare_station_slab(staloc2, dists2, max_tile_rows=8,
                                        num_cores=1)
    out3 = triangulate_loss_packed(slab3, ev2, **meta3)
    loss3 = float(jax.block_until_ready(out3["loss"]))
    assert np.isfinite(loss3)
    assert np.allclose(loss3, ref2, rtol=1e-3), (loss3, ref2)

    print("KERNEL_OK")
</pallas_src>

<mosaic_0001>
module attributes {stable_mosaic.version = 11 : i64} {
  func.func @_triangulate_kernel(%arg0: i32, %arg1: i32, %arg2: memref<3xf32, #tpu.memory_space<smem>>, %arg3: memref<4x8x128xf32, #tpu.memory_space<vmem>>, %arg4: memref<1x8x128xf32, #tpu.memory_space<vmem>>) attributes {dimension_semantics = [#tpu.dimension_semantics<parallel>, #tpu.dimension_semantics<arbitrary>], iteration_bounds = array<i64: 1, 1>, scalar_prefetch = 0 : i64, scratch_operands = 0 : i64, tpu.core_type = #tpu.core_type<tc>, window_params = [{transform_indices = @transform_0, window_bounds = array<i64: 3>}, {transform_indices = @transform_1, window_bounds = array<i64: 4, 8, 128>}, {transform_indices = @transform_2, window_bounds = array<i64: 1, 8, 128>}]} {
    %c0_i32 = arith.constant 0 : i32
    %0 = arith.cmpi eq, %arg1, %c0_i32 : i32
    %1 = arith.extui %0 : i1 to i32
    %c0_i32_0 = arith.constant 0 : i32
    %2 = arith.cmpi ne, %1, %c0_i32_0 : i32
    scf.if %2 {
      %cst_15 = arith.constant 0.000000e+00 : f32
      %39 = vector.broadcast %cst_15 : f32 to vector<1x8x128xf32>
      %c0_16 = arith.constant 0 : index
      %c0_17 = arith.constant 0 : index
      %c0_18 = arith.constant 0 : index
      %40 = vector.load %arg4[%c0_16, %c0_17, %c0_18] : memref<1x8x128xf32, #tpu.memory_space<vmem>>, vector<1x8x128xf32>
      tpu.vector_store %arg4[%c0_16, %c0_17, %c0_18], %39 {strides = array<i32>} : memref<1x8x128xf32, #tpu.memory_space<vmem>>, vector<1x8x128xf32>,
    } else {
    }
    %c0 = arith.constant 0 : index
    %3 = memref.load %arg2[%c0] : memref<3xf32, #tpu.memory_space<smem>>
    %c0_1 = arith.constant 0 : index
    %c0_2 = arith.constant 0 : index
    %c0_3 = arith.constant 0 : index
    %4 = vector.load %arg3[%c0_1, %c0_2, %c0_3] : memref<4x8x128xf32, #tpu.memory_space<vmem>>, vector<1x8x128xf32>
    %5 = vector.shape_cast %4 : vector<1x8x128xf32> to vector<8x128xf32>
    %6 = vector.broadcast %3 : f32 to vector<8x128xf32>
    %7 = arith.subf %6, %5 : vector<8x128xf32>
    %c1 = arith.constant 1 : index
    %8 = memref.load %arg2[%c1] : memref<3xf32, #tpu.memory_space<smem>>
    %c1_4 = arith.constant 1 : index
    %c0_5 = arith.constant 0 : index
    %c0_6 = arith.constant 0 : index
    %9 = vector.load %arg3[%c1_4, %c0_5, %c0_6] : memref<4x8x128xf32, #tpu.memory_space<vmem>>, vector<1x8x128xf32>
    %10 = vector.shape_cast %9 : vector<1x8x128xf32> to vector<8x128xf32>
    %11 = vector.broadcast %8 : f32 to vector<8x128xf32>
    %12 = arith.subf %11, %10 : vector<8x128xf32>
    %c2 = arith.constant 2 : index
    %13 = memref.load %arg2[%c2] : memref<3xf32, #tpu.memory_space<smem>>
    %c2_7 = arith.constant 2 : index
    %c0_8 = arith.constant 0 : index
    %c0_9 = arith.constant 0 : index
    %14 = vector.load %arg3[%c2_7, %c0_8, %c0_9] : memref<4x8x128xf32, #tpu.memory_space<vmem>>, vector<1x8x128xf32>
    %15 = vector.shape_cast %14 : vector<1x8x128xf32> to vector<8x128xf32>
    %16 = vector.broadcast %13 : f32 to vector<8x128xf32>
    %17 = arith.subf %16, %15 : vector<8x128xf32>
    %18 = arith.mulf %7, %7 : vector<8x128xf32>
    %19 = arith.mulf %12, %12 : vector<8x128xf32>
    %20 = arith.addf %18, %19 : vector<8x128xf32>
    %21 = arith.mulf %17, %17 : vector<8x128xf32>
    %22 = arith.addf %20, %21 : vector<8x128xf32>
    %23 = math.sqrt %22 : vector<8x128xf32>
    %cst = arith.constant 1.000000e-10 : f32
    %24 = vector.broadcast %cst : f32 to vector<8x128xf32>
    %25 = arith.addf %23, %24 : vector<8x128xf32>
    %c3 = arith.constant 3 : index
    %c0_10 = arith.constant 0 : index
    %c0_11 = arith.constant 0 : index
    %26 = vector.load %arg3[%c3, %c0_10, %c0_11] : memref<4x8x128xf32, #tpu.memory_space<vmem>>, vector<1x8x128xf32>
    %27 = vector.shape_cast %26 : vector<1x8x128xf32> to vector<8x128xf32>
    %28 = arith.subf %25, %27 : vector<8x128xf32>
    %c1_i32 = arith.constant 1 : i32
    %29 = arith.muli %arg0, %c1_i32 : i32
    %30 = arith.addi %29, %arg1 : i32
    %c1_i32_12 = arith.constant 1 : i32
    %31 = arith.addi %30, %c1_i32_12 : i32
    %c1024_i32 = arith.constant 1024 : i32
    %32 = arith.muli %31, %c1024_i32 : i32
    %c8_i32 = arith.constant 8 : i32
    %33 = arith.cmpi sle, %32, %c8_i32 : i32
    %34 = arith.extui %33 : i1 to i32
    %c0_i32_13 = arith.constant 0 : i32
    %35 = arith.cmpi ne, %34, %c0_i32_13 : i32
    scf.if %35 {
      %39 = arith.mulf %28, %28 : vector<8x128xf32>
      %c0_15 = arith.constant 0 : index
      %c0_16 = arith.constant 0 : index
      %c0_17 = arith.constant 0 : index
      %40 = vector.load %arg4[%c0_15, %c0_16, %c0_17] : memref<1x8x128xf32, #tpu.memory_space<vmem>>, vector<1x8x128xf32>
      %41 = vector.shape_cast %39 : vector<8x128xf32> to vector<1x1x8x128xf32>
      %cst_18 = arith.constant dense<0.000000e+00> : vector<1x8x128xf32>
      %42 = vector.multi_reduction <add>, %41, %cst_18 [1] : vector<1x1x8x128xf32> to vector<1x8x128xf32>
      %43 = arith.addf %40, %42 : vector<1x8x128xf32>
      %c0_19 = arith.constant 0 : index
      %c0_20 = arith.constant 0 : index
      %c0_21 = arith.constant 0 : index
      %44 = vector.load %arg4[%c0_19, %c0_20, %c0_21] : memref<1x8x128xf32, #tpu.memory_space<vmem>>, vector<1x8x128xf32>
      tpu.vector_store %arg4[%c0_19, %c0_20, %c0_21], %43 {strides = array<i32>} : memref<1x8x128xf32, #tpu.memory_space<vmem>>, vector<1x8x128xf32>,
    } else {
    }
    %true = arith.constant true
    %36 = arith.xori %33, %true : i1
    %37 = arith.extui %36 : i1 to i32
    %c0_i32_14 = arith.constant 0 : i32
    %38 = arith.cmpi ne, %37, %c0_i32_14 : i32
    scf.if %38 {
      %39 = tpu.iota {dimensions = array<i32: 0>} : vector<8x128xi32>
      %40 = tpu.iota {dimensions = array<i32: 1>} : vector<8x128xi32>
      %c8_i32_15 = arith.constant 8 : i32
      %41 = arith.muli %30, %c8_i32_15 : i32
      %42 = vector.broadcast %41 : i32 to vector<8x128xi32>
      %43 = arith.addi %42, %39 : vector<8x128xi32>
      %c128_i32 = arith.constant 128 : i32
      %44 = vector.broadcast %c128_i32 : i32 to vector<8x128xi32>
      %45 = arith.muli %43, %44 : vector<8x128xi32>
      %46 = arith.addi %45, %40 : vector<8x128xi32>
      %c8_i32_16 = arith.constant 8 : i32
      %47 = vector.broadcast %c8_i32_16 : i32 to vector<8x128xi32>
      %48 = arith.cmpi slt, %46, %47 : vector<8x128xi32>
      %cst_17 = arith.constant 0.000000e+00 : f32
      %49 = vector.broadcast %cst_17 : f32 to vector<8x128xf32>
      %50 = arith.select %48, %28, %49 : vector<8x128xi1>, vector<8x128xf32>
      %51 = arith.mulf %50, %50 : vector<8x128xf32>
      %c0_18 = arith.constant 0 : index
      %c0_19 = arith.constant 0 : index
      %c0_20 = arith.constant 0 : index
      %52 = vector.load %arg4[%c0_18, %c0_19, %c0_20] : memref<1x8x128xf32, #tpu.memory_space<vmem>>, vector<1x8x128xf32>
      %53 = vector.shape_cast %51 : vector<8x128xf32> to vector<1x1x8x128xf32>
      %cst_21 = arith.constant dense<0.000000e+00> : vector<1x8x128xf32>
      %54 = vector.multi_reduction <add>, %53, %cst_21 [1] : vector<1x1x8x128xf32> to vector<1x8x128xf32>
      %55 = arith.addf %52, %54 : vector<1x8x128xf32>
      %c0_22 = arith.constant 0 : index
      %c0_23 = arith.constant 0 : index
      %c0_24 = arith.constant 0 : index
      %56 = vector.load %arg4[%c0_22, %c0_23, %c0_24] : memref<1x8x128xf32, #tpu.memory_space<vmem>>, vector<1x8x128xf32>
      tpu.vector_store %arg4[%c0_22, %c0_23, %c0_24], %55 {strides = array<i32>} : memref<1x8x128xf32, #tpu.memory_space<vmem>>, vector<1x8x128xf32>,
    } else {
    }
    return
  }
  func.func @transform_0(%arg0: i32, %arg1: i32) -> i32 {
    %c0_i32 = arith.constant 0 : i32
    %c0_i32_0 = arith.constant 0 : i32
    return %c0_i32 : i32
  }
  func.func @transform_1(%arg0: i32, %arg1: i32) -> (i32, i32, i32) {
    %c1_i32 = arith.constant 1 : i32
    %0 = arith.muli %arg0, %c1_i32 : i32
    %1 = arith.addi %0, %arg1 : i32
    %c0_i32 = arith.constant 0 : i32
    %c0_i32_0 = arith.constant 0 : i32
    %c0_i32_1 = arith.constant 0 : i32
    return %c0_i32, %1, %c0_i32_0 : i32, i32, i32
  }
  func.func @transform_2(%arg0: i32, %arg1: i32) -> (i32, i32, i32) {
    %c0_i32 = arith.constant 0 : i32
    %c0_i32_0 = arith.constant 0 : i32
    %c0_i32_1 = arith.constant 0 : i32
    return %arg0, %c0_i32, %c0_i32_0 : i32, i32, i32
  }
}

</mosaic_0001>

<bundles_post_ra>
// kernel: tpu_custom_call.1
= control target key start
LH: loop header
LB: loop body
LE: loop exit
PB: predicated region body
PF: predicated region fallthrough
CT: control target
= control target key end

     0   :  { %7 = vsyncpa [#allocation5], 0  ;;  %s217_s0 = inlined_call_operand.hbm [shape: f32[3], index: 0, kind: input, shape index: {}]   ;;  %s218_s1 = inlined_call_operand.hbm [shape: f32[4,8,128], index: 1, kind: input, shape index: {}]   ;;  %s219_s2 = inlined_call_operand.hbm [shape: f32[1,8,128], index: 2, kind: output, shape index: {}]  }
   0x1   :  { %8 = vsyncpa [#allocation3], 0 }
   0x2   :  { %9 = vsyncpa [#allocation4], 0  ;;  %s188_s9 = smov [#allocation2]   ;;  %s189_s12 = smov [#allocation6]  }
   0x3   :  { %17 = dma.hbm_to_smem %s217_s0, 16, %s188_s9, [#allocation5]  }
   0x4   :  { %s26_s13 = sshll.u32 %s189_s12, 4  ;;  %s27_s13 = int_to_ptr.vmem [resolvable:$true] %s26_s13 }
   0x5   :  { %s150_s14 = scalar_lea.vmem %s27_s13, 512  ;;  %p155_p1 = scmp.lt.s32.totalorder %s27_s13, %s27_s13 }
   0x6   :  { %p151_p0 = scmp.ne.s32.totalorder %s27_s13, %s150_s14  ;;  %p156_p2 = scmp.lt.s32.totalorder %s150_s14, %s150_s14 }
   0x8   :  { %p157_p3 = por %p156_p2, %p155_p1 }
   0xa   :  { %p158_p4 = pnand %p157_p3, %p151_p0 }
   0xc   :  { %161 = shalt.err (!%p158_p4)
}
   0xd   :  { %s190_s15 = smov 128   ;;  %s191_s16 = smov 8  }
   0xe   :  { %32 = dma.hbm_to_vmem [thread:$0]  %s218_s1, 512, %s27_s13, [#allocation3], %s190_s15, %s190_s15, %s191_s16  }
   0xf   :  { %182 = dma.done.wait [#allocation5], 16  }
  0x10   :  { %183 = vsyncadd [#allocation5], 4294967280 }
  0x11   :  { %184 = dma.done.wait [#allocation3], 512  }
  0x12   :  { %185 = vsyncadd [#allocation3], 4294966784 }
  0x13   :  { %39 = sfence }
  0x14   :  { %s46_s0 = sld [smem:[#allocation2]]  ;;  %v47_v0 = vld [vmem:[#allocation6] sm:$0xff]  ;;  %v52_v1 = vld [vmem:[#allocation6 + $0x8] sm:$0xff]  ;;  %v57_v3 = vld [vmem:[#allocation6 + $0x10] sm:$0xff]  ;;  %v92_v14 = vlaneseq  ;;  %s192_s1 = smov [#allocation7]  }
  0x15   :  { %s124_s19 = sld [smem:[#allocation2 + $0x1]]  ;;  %v74_v24 = vld [vmem:[#allocation6 + $0x18] sm:$0xff]  ;;  %s114_s21 = sshll.u32 %s192_s1, 4  ;;  %s115_s21 = int_to_ptr.vmem [resolvable:$true] %s114_s21 }
  0x16   :  { %s125_s20 = sld [smem:[#allocation2 + $0x2]]  ;;  %v93_v15 = vshrl.u32 %v92_v14, 7  ;;  %v95_v16 = vand.u32 127, %v92_v14  ;;  %s162_s22 = scalar_lea.vmem %s115_s21, 128 }
  0x17   :  { %p163_p5 = scmp.ne.s32.totalorder %s115_s21, %s162_s22  ;;  %p167_p6 = scmp.lt.s32.totalorder %s115_s21, %s115_s21 }
  0x18   :  { %v99_v17 = vmul.u32 128, %v93_v15  ;;  %p168_p7 = scmp.lt.s32.totalorder %s162_s22, %s162_s22 }
  0x1a   :  { %v48_v2 = vstv %s46_s0  ;;  %v100_v21 = vadd.s32 %v99_v17, %v95_v16  ;;  %p169_p8 = por %p168_p7, %p167_p6 }
  0x1b   :  { %v49_v4 = vsub.f32 %v48_v2, %v47_v0  ;;  %v53_v5 = vstv %s124_s19 }
  0x1c   :  { %v54_v6 = vsub.f32 %v53_v5, %v52_v1  ;;  %v58_v7 = vstv %s125_s20  ;;  %vm101_vm2 = vcmp.lt.s32.totalorder %v100_v21, 8  ;;  %p170_p9 = pnand %p169_p8, %p163_p5 }
  0x1d   :  { %v59_v8 = vsub.f32 %v58_v7, %v57_v3  ;;  %v60_v9 = vmul.f32 %v49_v4, %v49_v4 }
  0x1e   :  { %v61_v10 = vmul.f32 %v54_v6, %v54_v6 }
  0x1f   :  { %v63_v11 = vmul.f32 %v59_v8, %v59_v8 }
  0x20   :  { %v62_v12 = vadd.f32 %v61_v10, %v60_v9 }
  0x22   :  { %v64_v13 = vadd.f32 %v63_v11, %v62_v12 }
  0x24   :  { %132 = vrsqrt.f32 %v64_v13  ;;  %vm67_vm0 = vcmp.eq.f32.partialorder %v64_v13, inf  ;;  %v70_v19 = vand.u32 2147483648, %v64_v13  ;;  %vm69_vm1 = vcmp.eq.f32.partialorder %v64_v13, 0.0 }
  0x31   :  { %v133_v18 = vpop.eup %132 }
  0x32   :  { %v66_v20 = vmul.f32 %v133_v18, %v64_v13 }
  0x34   :  { %v68_v22 = vsel %vm67_vm0, %v64_v13, %v66_v20 }
  0x35   :  { %v71_v23 = vsel %vm69_vm1, %v70_v19, %v68_v22 }
  0x36   :  { %v72_v25 = vadd.f32 1e-10, %v71_v23 }
  0x38   :  { %v75_v26 = vsub.f32 %v72_v25, %v74_v24 }
  0x3a   :  { %v102_v27 = vsel %vm101_vm2, %v75_v26, 0.0 }
  0x3b   :  { %v103_v28 = vmul.f32 %v102_v27, %v102_v27 }
  0x3d   :  { %107 = vst [vmem:[#allocation7] sm:$0xff] %v103_v28 }
  0x3e   :  { %173 = shalt.err (!%p170_p9)
}
  0x3f   :  { %117 = dma.vmem_to_hbm [thread:$0]  %s115_s21, 128, %s219_s2, [#allocation4]  }
  0x40   :  { %186 = dma.done.wait [#allocation4], 128  }
  0x41   :  { %187 = vsyncadd [#allocation4], 4294967168 }
  0x42   :  { %121 = vsyncpa [#allocation3], 1 }
  0x43   :  { %122 = vsyncpa [#allocation4], 1 }
  0x44   :  { %123 = vsyncpa [#allocation5], 1 }

</bundles_post_ra>
